<compile_context>
chip_gen: v6e
topology: v6e:2x2x1
jax: 0.10.0
libtpu: 0.0.40
codegen_flags: <defaults>
</compile_context>

<pallas_src>
import math
from functools import partial

import jax
import jax.numpy as jnp
from jax.experimental import pallas as pl
from jax.experimental.pallas import tpu as pltpu


def _seq_attn_pool_kernel(qw_ref, hist_ref, valid_ref, o_ref, *, mxu_dtype):
    """One grid step handles TILE_B history rows.

    qw_ref    : (T, H)     pre-projected query rows (query @ W) for this tile
    hist_ref  : (T, L, H)  history rows of this tile
    valid_ref : (B, L)     int32 validity mask (grid-invariant): 1 where l < length[j]
    o_ref     : (T, B, H)  output slab
    """
    qw = qw_ref[...].astype(jnp.float32)                 # (T, H)
    hist = hist_ref[...]                                 # (T, L, H)
    hist_f32 = hist.astype(jnp.float32)
    valid = valid_ref[...] != 0                          # (B, L) bool

    # logits[t, l] = sum_h qw[t, h] * hist[t, l, h] — contraction on H in native
    # layout (VPU multiply + lane reduce); no transpose, no 1-row MXU matmuls.
    logits = jnp.sum(hist_f32 * qw[:, None, :], axis=-1)              # (T, L)

    # torch masked_fill broadcast: masked[t, j, l] = 1e-9 if valid[j, l] else logits[t, l]
    masked = jnp.where(valid[None, :, :], jnp.float32(1e-9),
                       logits[:, None, :])                            # (T, B, L)

    # softmax over l (f32); normalization folded after the matmul.
    m = jnp.max(masked, axis=-1, keepdims=True)                       # (T, B, 1)
    e = jnp.exp(masked - m)                                           # (T, B, L)
    denom = jnp.sum(e, axis=-1, keepdims=True)                        # (T, B, 1)

    if mxu_dtype is not None:
        e_mm = e.astype(mxu_dtype)
        h_mm = hist.astype(mxu_dtype)
    else:
        e_mm = e
        h_mm = hist_f32

    # out_unnorm[t, j, :] = e[t, j, :] @ hist[t]  — batched MXU matmul, native layout.
    num = jnp.einsum('tjl,tlh->tjh', e_mm, h_mm,
                     preferred_element_type=jnp.float32)              # (T, B, H)

    # EUP approximate reciprocal + one Newton step (error ~eps^2, effectively f32).
    inv = pl.reciprocal(denom, approx=True)
    inv = inv * (2.0 - denom * inv)

    o_ref[...] = (num * inv).astype(o_ref.dtype)


def sequence_attention_pooling(query_ad, biInt_weight, hist_behavior,
                               hist_behavior_length, *, tile_b=8, mxu_dtype=None):
    B, Q = query_ad.shape
    Bh, L, H = hist_behavior.shape
    assert Bh == B

    # Hoisted projection: one (B,Q)x(Q,H) matmul outside the grid.
    qw = jnp.dot(query_ad.astype(jnp.float32), biInt_weight.astype(jnp.float32),
                 preferred_element_type=jnp.float32)                  # (B, H)

    # Grid-invariant validity mask (computed once, DMA'd once).
    lens = hist_behavior_length.astype(jnp.int32)
    valid = (jnp.arange(L, dtype=jnp.int32)[None, :] < lens[:, None]).astype(jnp.int32)

    # Block the batch grid axis; pad the history-batch axis to a multiple of the tile.
    T = min(tile_b, B)
    Bp = ((B + T - 1) // T) * T
    if Bp != B:
        pad = Bp - B
        qw_p = jnp.pad(qw, ((0, pad), (0, 0)))
        hist_p = jnp.pad(hist_behavior, ((0, pad), (0, 0), (0, 0)))
    else:
        qw_p, hist_p = qw, hist_behavior

    flops = Bp * L * H * 2 + Bp * B * L * H * 2 + Bp * B * L * 4
    transcendentals = Bp * B * L + Bp * B
    bytes_accessed = 4 * (Bp * H + Bp * L * H + B * L + Bp * B * H)

    out = pl.pallas_call(
        partial(_seq_attn_pool_kernel, mxu_dtype=mxu_dtype),
        out_shape=jax.ShapeDtypeStruct((Bp, B, H), query_ad.dtype),
        grid=(Bp // T,),
        in_specs=[
            pl.BlockSpec((T, H), lambda i: (i, 0)),        # qw rows of this tile
            pl.BlockSpec((T, L, H), lambda i: (i, 0, 0)),  # hist rows of this tile
            pl.BlockSpec((B, L), lambda i: (0, 0)),        # grid-invariant mask
        ],
        out_specs=pl.BlockSpec((T, B, H), lambda i: (i, 0, 0)),
        compiler_params=pltpu.CompilerParams(
            dimension_semantics=("parallel",),
            vmem_limit_bytes=32 * 1024 * 1024,
        ),
        cost_estimate=pl.CostEstimate(
            flops=flops, transcendentals=transcendentals,
            bytes_accessed=bytes_accessed),
    )(qw_p, hist_p, valid)

    out = out[:B]
    # torch: output.squeeze(1) — only removes dim 1 when it is of size 1 (B == 1)
    if out.shape[1] == 1:
        out = out[:, 0, :]
    return out


def _reference(query_ad, biInt_weight, hist_behavior, hist_behavior_length):
    """Pure-JAX transliteration of the PyTorch forward, for verification."""
    B, L, H = hist_behavior.shape
    logits = jnp.einsum('bq,qh,blh->bl', query_ad, biInt_weight, hist_behavior)  # (B, L)
    att = logits[:, None, :]                                                      # (B, 1, L)
    mask = jnp.arange(L)[None, :] < hist_behavior_length[:, None]                 # (B, L)
    masked = jnp.where(mask[None, :, :], jnp.float32(1e-9), att)                  # (B, B, L)
    scores = jax.nn.softmax(masked, axis=-1)
    out = jnp.einsum('ijl,ilh->ijh', scores, hist_behavior)                       # (B, B, H)
    if out.shape[1] == 1:
        out = out[:, 0, :]
    return out


if __name__ == "__main__":
    B, Q, L, H = 2, 8, 8, 32   # batch, query_dim, seq_len, user_hist_dim

    key = jax.random.PRNGKey(0)
    k_w, k_q, k_h, k_l = jax.random.split(key, 4)

    # xavier_normal_ init for biInt_weight: std = sqrt(2 / (fan_in + fan_out))
    std = math.sqrt(2.0 / (Q + H))
    biInt_weight = (std * jax.random.normal(k_w, (Q, H))).astype(jnp.float32)

    query_ad = jax.random.normal(k_q, (B, Q), dtype=jnp.float32)
    hist_behavior = jax.random.normal(k_h, (B, L, H), dtype=jnp.float32)
    hist_behavior_length = jax.random.randint(k_l, (B,), 1, L + 1).astype(jnp.int32)

    out = sequence_attention_pooling(query_ad, biInt_weight, hist_behavior,
                                     hist_behavior_length)
    out = jax.block_until_ready(out)

    ref = _reference(query_ad, biInt_weight, hist_behavior, hist_behavior_length)
    assert out.shape == ref.shape, (out.shape, ref.shape)
    err = float(jnp.max(jnp.abs(out - ref)))
    # Tolerance allows for the EUP approximate-reciprocal (+ Newton step) softmax norm.
    assert jnp.allclose(out, ref, rtol=1e-3, atol=1e-3), err

    print("KERNEL_OK")
</pallas_src>

<mosaic_0001>
module attributes {stable_mosaic.version = 11 : i64} {
  func.func @_seq_attn_pool_kernel(%arg0: i32, %arg1: memref<2x32xf32, #tpu.memory_space<vmem>>, %arg2: memref<2x8x32xf32, #tpu.memory_space<vmem>>, %arg3: memref<2x8xi32, #tpu.memory_space<vmem>>, %arg4: memref<2x2x32xf32, #tpu.memory_space<vmem>>) attributes {dimension_semantics = [#tpu.dimension_semantics<parallel>], iteration_bounds = array<i64: 1>, scalar_prefetch = 0 : i64, scratch_operands = 0 : i64, tpu.core_type = #tpu.core_type<tc>, window_params = [{transform_indices = @transform_0, window_bounds = array<i64: 2, 32>}, {transform_indices = @transform_1, window_bounds = array<i64: 2, 8, 32>}, {pipeline_mode = #tpu.pipeline_mode<synchronous>, transform_indices = @transform_2, window_bounds = array<i64: 2, 8>}, {transform_indices = @transform_3, window_bounds = array<i64: 2, 2, 32>}]} {
    %c0 = arith.constant 0 : index
    %c0_0 = arith.constant 0 : index
    %0 = vector.load %arg1[%c0, %c0_0] : memref<2x32xf32, #tpu.memory_space<vmem>>, vector<2x32xf32>
    %c0_1 = arith.constant 0 : index
    %c0_2 = arith.constant 0 : index
    %c0_3 = arith.constant 0 : index
    %1 = vector.load %arg2[%c0_1, %c0_2, %c0_3] : memref<2x8x32xf32, #tpu.memory_space<vmem>>, vector<2x8x32xf32>
    %c0_4 = arith.constant 0 : index
    %c0_5 = arith.constant 0 : index
    %2 = vector.load %arg3[%c0_4, %c0_5] : memref<2x8xi32, #tpu.memory_space<vmem>>, vector<2x8xi32>
    %c0_i32 = arith.constant 0 : i32
    %3 = vector.broadcast %c0_i32 : i32 to vector<2x8xi32>
    %4 = arith.cmpi ne, %2, %3 : vector<2x8xi32>
    %5 = vector.shape_cast %0 : vector<2x32xf32> to vector<2x1x32xf32>
    %6 = vector.broadcast %5 : vector<2x1x32xf32> to vector<2x8x32xf32>
    %7 = arith.mulf %1, %6 : vector<2x8x32xf32>
    %cst = arith.constant dense<0.000000e+00> : vector<2x8xf32>
    %8 = vector.multi_reduction <add>, %7, %cst [2] : vector<2x8x32xf32> to vector<2x8xf32>
    %9 = vector.shape_cast %4 : vector<2x8xi1> to vector<1x2x8xi1>
    %10 = vector.shape_cast %8 : vector<2x8xf32> to vector<2x1x8xf32>
    %cst_6 = arith.constant 9.99999971E-10 : f32
    %11 = vector.shape_cast %9 : vector<1x2x8xi1> to vector<1x2x8xi1>
    %12 = vector.broadcast %11 : vector<1x2x8xi1> to vector<2x2x8xi1>
    %13 = vector.broadcast %cst_6 : f32 to vector<2x2x8xf32>
    %14 = vector.shape_cast %10 : vector<2x1x8xf32> to vector<2x1x8xf32>
    %15 = vector.broadcast %14 : vector<2x1x8xf32> to vector<2x2x8xf32>
    %16 = arith.select %12, %13, %15 : vector<2x2x8xi1>, vector<2x2x8xf32>
    %cst_7 = arith.constant dense<0xFF800000> : vector<2x2xf32>
    %17 = vector.multi_reduction <maximumf>, %16, %cst_7 [2] : vector<2x2x8xf32> to vector<2x2xf32>
    %18 = vector.shape_cast %17 : vector<2x2xf32> to vector<2x2x1xf32>
    %19 = vector.broadcast %18 : vector<2x2x1xf32> to vector<2x2x8xf32>
    %20 = arith.subf %16, %19 : vector<2x2x8xf32>
    %21 = math.exp %20 : vector<2x2x8xf32>
    %cst_8 = arith.constant dense<0.000000e+00> : vector<2x2xf32>
    %22 = vector.multi_reduction <add>, %21, %cst_8 [2] : vector<2x2x8xf32> to vector<2x2xf32>
    %23 = vector.shape_cast %22 : vector<2x2xf32> to vector<2x2x1xf32>
    "tpu.trace_start"() <{level = 10 : i32, message = "tjl,tlh->tjh"}> : () -> ()
    %cst_9 = arith.constant dense<0.000000e+00> : vector<2x2x32xf32>
    %24 = tpu.matmul %21, %1, %cst_9 {dimension_numbers = #tpu.dot_dimension_numbers<[2], [1], [1], [2], [0, 0, 0, 1, 1, 2], [0], [0]>} : vector<2x2x8xf32>, vector<2x8x32xf32>, vector<2x2x32xf32> -> vector<2x2x32xf32>
    "tpu.trace_stop"() : () -> ()
    %25 = tpu.reciprocal %23 {approx = true} : vector<2x2x1xf32> -> vector<2x2x1xf32>
    %26 = arith.mulf %23, %25 : vector<2x2x1xf32>
    %cst_10 = arith.constant 2.000000e+00 : f32
    %27 = vector.broadcast %cst_10 : f32 to vector<2x2x1xf32>
    %28 = arith.subf %27, %26 : vector<2x2x1xf32>
    %29 = arith.mulf %25, %28 : vector<2x2x1xf32>
    %30 = vector.broadcast %29 : vector<2x2x1xf32> to vector<2x2x32xf32>
    %31 = arith.mulf %24, %30 : vector<2x2x32xf32>
    %c0_11 = arith.constant 0 : index
    %c0_12 = arith.constant 0 : index
    %c0_13 = arith.constant 0 : index
    %32 = vector.load %arg4[%c0_11, %c0_12, %c0_13] : memref<2x2x32xf32, #tpu.memory_space<vmem>>, vector<2x2x32xf32>
    tpu.vector_store %arg4[%c0_11, %c0_12, %c0_13], %31 {strides = array<i32>} : memref<2x2x32xf32, #tpu.memory_space<vmem>>, vector<2x2x32xf32>,
    return
  }
  func.func @transform_0(%arg0: i32) -> (i32, i32) {
    %c0_i32 = arith.constant 0 : i32
    %c0_i32_0 = arith.constant 0 : i32
    return %arg0, %c0_i32 : i32, i32
  }
  func.func @transform_1(%arg0: i32) -> (i32, i32, i32) {
    %c0_i32 = arith.constant 0 : i32
    %c0_i32_0 = arith.constant 0 : i32
    %c0_i32_1 = arith.constant 0 : i32
    return %arg0, %c0_i32, %c0_i32_0 : i32, i32, i32
  }
  func.func @transform_2(%arg0: i32) -> (i32, i32) {
    %c0_i32 = arith.constant 0 : i32
    %c0_i32_0 = arith.constant 0 : i32
    %c0_i32_1 = arith.constant 0 : i32
    return %c0_i32, %c0_i32_0 : i32, i32
  }
  func.func @transform_3(%arg0: i32) -> (i32, i32, i32) {
    %c0_i32 = arith.constant 0 : i32
    %c0_i32_0 = arith.constant 0 : i32
    %c0_i32_1 = arith.constant 0 : i32
    return %arg0, %c0_i32, %c0_i32_0 : i32, i32, i32
  }
}

</mosaic_0001>

<bundles_post_ra>
// kernel: tpu_custom_call.1
= control target key start
LH: loop header
LB: loop body
LE: loop exit
PB: predicated region body
PF: predicated region fallthrough
CT: control target
= control target key end

     0   :  { %8 = vsyncpa [#allocation3], 0  ;;  %s450_s0 = inlined_call_operand.hbm [shape: f32[2,32], index: 0, kind: input, shape index: {}]   ;;  %s451_s1 = inlined_call_operand.hbm [shape: f32[2,8,32], index: 1, kind: input, shape index: {}]   ;;  %s452_s2 = inlined_call_operand.vmem [shape: s32[2,8], index: 2, kind: input, shape index: {}]   ;;  %s453_s3 = inlined_call_operand.hbm [shape: f32[2,2,32], index: 3, kind: output, shape index: {}]  }
   0x1   :  { %9 = vsyncpa [#allocation6], 0 }
   0x2   :  { %10 = vsyncpa [#allocation4], 0  ;;  %s404_s12 = smov [#allocation2]   ;;  %s405_s14 = smov [#allocation5]  }
   0x3   :  { %s17_s13 = sshll.u32 %s404_s12, 4  ;;  %s26_s15 = sshll.u32 %s405_s14, 4  ;;  %s18_s13 = int_to_ptr.vmem [resolvable:$true] %s17_s13  ;;  %s27_s15 = int_to_ptr.vmem [resolvable:$true] %s26_s15 }
   0x4   :  { %s346_s16 = scalar_lea.vmem %s18_s13, 32  ;;  %p351_p1 = scmp.lt.s32.totalorder %s18_s13, %s18_s13 }
   0x5   :  { %p347_p0 = scmp.ne.s32.totalorder %s18_s13, %s346_s16  ;;  %p352_p2 = scmp.lt.s32.totalorder %s346_s16, %s346_s16 }
   0x7   :  { %p353_p3 = por %p352_p2, %p351_p1 }
   0x9   :  { %p354_p4 = pnand %p353_p3, %p347_p0 }
   0xb   :  { %357 = shalt.err (!%p354_p4)
}
   0xc   :  { %20 = dma.hbm_to_vmem [thread:$0]  %s450_s0, 32, %s18_s13, [#allocation3]  }
   0xd   :  { %s366_s19 = scalar_lea.vmem %s27_s15, 256  ;;  %p371_p6 = scmp.lt.s32.totalorder %s27_s15, %s27_s15 }
   0xe   :  { %p367_p5 = scmp.ne.s32.totalorder %s27_s15, %s366_s19  ;;  %p372_p7 = scmp.lt.s32.totalorder %s366_s19, %s366_s19 }
  0x10   :  { %p373_p8 = por %p372_p7, %p371_p6 }
  0x12   :  { %p374_p9 = pnand %p373_p8, %p367_p5 }
  0x14   :  { %377 = shalt.err (!%p374_p9)
}
  0x15   :  { %s406_s20 = smov 128   ;;  %s407_s21 = smov 8  }
  0x16   :  { %32 = dma.hbm_to_vmem [thread:$0]  %s451_s1, 256, %s27_s15, [#allocation6], %s406_s20, %s406_s20, %s407_s21  }
  0x17   :  { %398 = dma.done.wait [#allocation3], 32  }
  0x18   :  { %399 = vsyncadd [#allocation3], 4294967264 }
  0x19   :  { %400 = dma.done.wait [#allocation6], 256  }
  0x1a   :  { %401 = vsyncadd [#allocation6], 4294967040  ;;  %v58_v0 = vlaneseq  ;;  %v408_v1 = vmov 1966171168   ;;  %v42_v12 = vld [vmem:[#allocation5] sm:$0xff]  ;;  %vm81_vm0 = vcmask 261120  }
  0x1b   :  { %v56_v2 = vunpack.c.l.s4 %v408_v1  ;;  %v303_v9 = vld.sshfl [vmem:[#allocation2] sm:$0x11 pattern:$0x75316420]  ;;  %v43_v15 = vld [vmem:[#allocation5 + $0x8] sm:$0xff]  ;;  %vm106_vm2 = vcmask 58368  }
  0x1c   :  { %v59_v3 = vshrl.u32 %v58_v0, 7  ;;  %v93_v4 = vand.u32 127, %v58_v0  ;;  %v54_v11 = vcombine.high %v303_v9, %v303_v9  ;;  %v44_v21 = vld [vmem:[%s452_s2] sm:$0x3]  ;;  %v409_v30 = vmov 0.0   ;;  %s411_s2 = smov [#allocation7]  }
  0x1d   :  { %v57_v5 = vunpack.c.0.s8 %v56_v2  ;;  %vm45_vm1 = vcmp.ne.s32.totalorder %v44_v21, 0  ;;  %310 = vmatprep.subr.mxu0 %v409_v30  ;;  %vm410_vm3 = vmmov 0   ;;  %315 = vmatprep.subr.mxu1 %v409_v30  ;;  %vm125_vm4 = vcmask 64512   ;;  %s290_s24 = sshll.u32 %s411_s2, 4  ;;  %s291_s24 = int_to_ptr.vmem [resolvable:$true] %s290_s24 }
  0x1e   :  { %v96_v6 = vsub.s32 %v93_v4, %v59_v3  ;;  %v71_v8 = vsub.s32 0, %v59_v3  ;;  %312 = vmatprep.mubr.msk.f32.mxu0 %vm410_vm3, %v409_v30  ;;  %311 = vmatpush3.msra.mxu0 %v42_v12  ;;  %vm282_vm5 = vcmask 254976   ;;  %s378_s25 = scalar_lea.vmem %s291_s24, 64  ;;  %p383_p11 = scmp.lt.s32.totalorder %s291_s24, %s291_s24 }
  0x1f   :  { %v60_v7 = vsub.s32 %v57_v5, %v59_v3  ;;  %316 = vmatpush3.msra.mxu1 %v43_v15  ;;  %317 = vmatprep.mubr.msk.f32.mxu1 %vm410_vm3, %v409_v30  ;;  %p379_p10 = scmp.ne.s32.totalorder %s291_s24, %s378_s25  ;;  %p384_p12 = scmp.lt.s32.totalorder %s378_s25, %s378_s25 }
  0x21   :  { %v61_v10 = vrot.slane %v303_v9, %v60_v7  ;;  %v68_v14 = vrot.slane %v54_v11, %v60_v7  ;;  %p385_p13 = por %p384_p12, %p383_p11 }
  0x23   :  { %v72_v13 = vrot.slane %v61_v10, %v71_v8  ;;  %v76_v17 = vrot.slane %v68_v14, %v71_v8  ;;  %p386_p0 = pnand %p385_p13, %p379_p10 }
  0x25   :  { %v79_v16 = vmul.f32 %v72_v13, %v42_v12  ;;  %v80_v19 = vmul.f32 %v76_v17, %v43_v15 }
  0x27   :  { %v82_v18 = vsel %vm81_vm0, %v79_v16, 0.0  ;;  %v85_v20 = vsel %vm81_vm0, %v80_v19, 0.0 }
  0x28   :  { %83 = vadd.xlane.f32.xlu0 %v82_v18 }
  0x2c   :  { %86 = vadd.xlane.f32.xlu0 %v85_v20 }
  0xb1   :  { %v84_v22 = vpop.xlane.xlu0 %83 }
  0xb2   :  { %v97_v23 = vrot.slane %v84_v22, %v96_v6 }
  0xb4   :  { %v104_v24 = vsel %vm45_vm1, 1e-09, %v97_v23 }
  0xb5   :  { %v87_v25 = vpop.xlane.xlu0 %86  ;;  %v107_v26 = vsel %vm106_vm2, %v104_v24, -inf }
  0xb6   :  { %v101_v27 = vrot.slane %v87_v25, %v96_v6  ;;  %108 = vmax.xlane.f32.xlu1 %v107_v26 }
  0xb8   :  { %v105_v28 = vsel %vm45_vm1, 1e-09, %v101_v27 }
  0xb9   :  { %v110_v29 = vsel %vm106_vm2, %v105_v28, -inf }
  0xba   :  { %111 = vmax.xlane.f32.xlu1 %v110_v29 }
 0x13f   :  { %v109_v31 = vpop.xlane.xlu1 %108 }
 0x140   :  { %v113_v32 = vsub.f32 %v104_v24, %v109_v31 }
 0x142   :  { %v115_v33 = vmul.f32 1.442695, %v113_v32 }
 0x143   :  { %v112_v34 = vpop.xlane.xlu1 %111 }
 0x144   :  { %330 = vpow2.f32 %v115_v33  ;;  %v114_v35 = vsub.f32 %v105_v28, %v112_v34 }
 0x146   :  { %v117_v36 = vmul.f32 1.442695, %v114_v35 }
 0x148   :  { %332 = vpow2.f32 %v117_v36 }
 0x151   :  { %v331_v37 = vpop.eup %330 }
 0x152   :  { %313 = vmatmul.mubr.msk.f32.vlgmr.msra.gmra.mxu0 %vm125_vm4, %v331_v37  ;;  %v119_v38 = vsel %vm106_vm2, %v331_v37, 0.0 }
 0x153   :  { %120 = vadd.xlane.f32.xlu0 %v119_v38 }
 0x155   :  { %v333_v39 = vpop.eup %332 }
 0x156   :  { %318 = vmatmul.mubr.msk.f32.vlgmr.msra.gmra.mxu1 %vm125_vm4, %v333_v39  ;;  %v122_v40 = vsel %vm106_vm2, %v333_v39, 0.0 }
 0x157   :  { %123 = vadd.xlane.f32.xlu1 %v122_v40 }
 0x1dc   :  { %v121_v41 = vpop.xlane.xlu0 %120 }
 0x1dd   :  { %334 = vrcp.f32 %v121_v41 }
 0x1e0   :  { %v124_v42 = vpop.xlane.xlu1 %123 }
 0x1e1   :  { %336 = vrcp.f32 %v124_v42 }
 0x1ea   :  { %v335_v43 = vpop.eup %334 }
 0x1eb   :  { %v274_v44 = vmul.f32 %v335_v43, %v121_v41 }
 0x1ed   :  { %v276_v46 = vsub.f32 2.0, %v274_v44 }
 0x1ee   :  { %v337_v45 = vpop.eup %336 }
 0x1ef   :  { %v275_v47 = vmul.f32 %v337_v45, %v124_v42  ;;  %v278_v49 = vmul.f32 %v335_v43, %v276_v46 }
 0x1f1   :  { %v277_v48 = vsub.f32 2.0, %v275_v47 }
 0x1f3   :  { %v279_v53 = vmul.f32 %v337_v45, %v277_v48 }
 0x212   :  { %v195_v50 = vpop.f32.mrf.mxu0 }
 0x213   :  { %v280_v51 = vmul.f32 %v278_v49, %v195_v50 }
 0x214   :  { %v314_v52 = vpop.f32.mrf.mxu0 }
 0x215   :  { %283 = vst.msk [vmem:[#allocation7] sm:$0x3] %vm282_vm5, %v280_v51 }
 0x216   :  { %v268_v54 = vpop.f32.mrf.mxu1 }
 0x217   :  { %v281_v55 = vmul.f32 %v279_v53, %v268_v54 }
 0x218   :  { %v319_v56 = vpop.f32.mrf.mxu1 }
 0x219   :  { %284 = vst.msk [vmem:[#allocation7 + $0x2] sm:$0x3] %vm282_vm5, %v281_v55 }
 0x21a   :  { %389 = shalt.err (!%p386_p0)
}
 0x21b   :  { %s412_s26 = smov 32   ;;  %s413_s27 = smov 2  }
 0x21c   :  { %296 = dma.vmem_to_hbm [thread:$0]  %s291_s24, 64, %s453_s3, [#allocation4], %s412_s26, %s412_s26, %s413_s27  }
 0x21d   :  { %402 = dma.done.wait [#allocation4], 64  }
 0x21e   :  { %403 = vsyncadd [#allocation4], 4294967232 }
 0x21f   :  { %300 = vsyncpa [#allocation3], 1 }
 0x220   :  { %301 = vsyncpa [#allocation6], 1 }
 0x221   :  { %302 = vsyncpa [#allocation4], 1 }

</bundles_post_ra>
